<compile_context>
chip_gen: v7x
topology: tpu7x:2x2x1
jax: 0.10.0
libtpu: 0.0.40
codegen_flags: <defaults>
</compile_context>

<pallas_src>
import functools

import jax
import jax.numpy as jnp
from jax.experimental import pallas as pl
from jax.experimental.pallas import tpu as pltpu


def _round_up(x, m):
    return ((x + m - 1) // m) * m


def _pick_tile(n_pad, max_tile=1024):
    """Largest multiple of 128 that divides n_pad, capped at max_tile."""
    best = 128
    t = 128
    while t <= min(max_tile, n_pad):
        if n_pad % t == 0:
            best = t
        t += 128
    return best


_VMEM_LIMIT = 48 * 1024 * 1024  # headroom vs 64 MiB/TC on v7x (128 MiB v5e/v6e)


# ---------------------------------------------------------------------------
# Kernel 1: feature transform  XW = X @ W   (hoisted out of aggregation)
# The bf16 cast of X/H happens in-kernel (no separate XLA cast pass).
# ---------------------------------------------------------------------------
def _xw_kernel(x_ref, w_ref, o_ref):
    o_ref[...] = jnp.dot(
        x_ref[...].astype(jnp.bfloat16),
        w_ref[...],
        preferred_element_type=jnp.float32,
    ).astype(o_ref.dtype)


def _linear(x, w_bf16, *, tile_m):
    n_pad, c_in = x.shape
    c_out = w_bf16.shape[1]
    return pl.pallas_call(
        _xw_kernel,
        out_shape=jax.ShapeDtypeStruct((n_pad, c_out), jnp.bfloat16),
        grid_spec=pltpu.PrefetchScalarGridSpec(
            num_scalar_prefetch=0,
            grid=(n_pad // tile_m,),
            in_specs=[
                pl.BlockSpec((tile_m, c_in), lambda i: (i, 0)),
                pl.BlockSpec((c_in, c_out), lambda i: (0, 0)),
            ],
            out_specs=pl.BlockSpec((tile_m, c_out), lambda i: (i, 0)),
        ),
        compiler_params=pltpu.CompilerParams(
            dimension_semantics=("parallel",),
            vmem_limit_bytes=_VMEM_LIMIT,
        ),
        cost_estimate=pl.CostEstimate(
            flops=2 * n_pad * c_in * c_out,
            transcendentals=0,
            bytes_accessed=x.dtype.itemsize * n_pad * c_in
            + 2 * c_in * c_out
            + 2 * n_pad * c_out,
        ),
    )(x, w_bf16)


# ---------------------------------------------------------------------------
# Kernel 2: aggregation  out = A_hat @ XW + b  [+ ReLU]
#   grid = (row blocks, contraction blocks); XW is fully VMEM-resident
#   (constant block index -> one DMA per row block), sliced in-kernel.
# ---------------------------------------------------------------------------
def _aggregate_bf16_kernel(a_ref, xw_ref, b_ref, o_ref, acc_ref, *,
                           tile_k, apply_relu):
    k = pl.program_id(1)

    @pl.when(k == 0)
    def _():
        acc_ref[...] = jnp.zeros_like(acc_ref)

    ks = pl.multiple_of(k * tile_k, tile_k)
    acc_ref[...] += jnp.dot(
        a_ref[...], xw_ref[pl.ds(ks, tile_k), :],
        preferred_element_type=jnp.float32,
    )

    @pl.when(k == pl.num_programs(1) - 1)
    def _():
        h = acc_ref[...] + b_ref[...]
        if apply_relu:
            h = jnp.maximum(h, 0.0)
        o_ref[...] = h.astype(o_ref.dtype)


def _aggregate_f32_kernel(a_ref, xw_ref, b_ref, o_ref, *, tile_k, apply_relu):
    # f32 output: accumulate directly into the resident output block.
    k = pl.program_id(1)

    @pl.when(k == 0)
    def _():
        o_ref[...] = jnp.zeros_like(o_ref)

    ks = pl.multiple_of(k * tile_k, tile_k)
    o_ref[...] += jnp.dot(
        a_ref[...], xw_ref[pl.ds(ks, tile_k), :],
        preferred_element_type=jnp.float32,
    )

    @pl.when(k == pl.num_programs(1) - 1)
    def _():
        h = o_ref[...] + b_ref[...]
        if apply_relu:
            h = jnp.maximum(h, 0.0)
        o_ref[...] = h


def _aggregate(a_hat_bf16, xw_bf16, bias_f32, *, tile_m, tile_k, apply_relu,
               out_dtype):
    n_pad = a_hat_bf16.shape[0]
    c_out = xw_bf16.shape[1]
    grid = (n_pad // tile_m, n_pad // tile_k)

    if jnp.dtype(out_dtype) == jnp.dtype(jnp.float32):
        kernel = functools.partial(
            _aggregate_f32_kernel, tile_k=tile_k, apply_relu=apply_relu)
        scratch_shapes = ()
    else:
        kernel = functools.partial(
            _aggregate_bf16_kernel, tile_k=tile_k, apply_relu=apply_relu)
        scratch_shapes = (pltpu.VMEM((tile_m, c_out), jnp.float32),)

    out_bytes = jnp.dtype(out_dtype).itemsize
    return pl.pallas_call(
        kernel,
        out_shape=jax.ShapeDtypeStruct((n_pad, c_out), out_dtype),
        grid_spec=pltpu.PrefetchScalarGridSpec(
            num_scalar_prefetch=0,
            grid=grid,
            in_specs=[
                pl.BlockSpec((tile_m, tile_k), lambda i, k: (i, k)),
                # XW fully resident: constant block index -> single DMA,
                # sliced per k step inside the kernel.
                pl.BlockSpec((n_pad, c_out), lambda i, k: (0, 0)),
                pl.BlockSpec((1, c_out), lambda i, k: (0, 0)),
            ],
            out_specs=pl.BlockSpec((tile_m, c_out), lambda i, k: (i, 0)),
            scratch_shapes=scratch_shapes,
        ),
        compiler_params=pltpu.CompilerParams(
            dimension_semantics=("parallel", "arbitrary"),
            vmem_limit_bytes=_VMEM_LIMIT,
        ),
        cost_estimate=pl.CostEstimate(
            flops=2 * n_pad * n_pad * c_out,
            transcendentals=0,
            bytes_accessed=2 * n_pad * n_pad           # A_hat stream (bf16)
            + 2 * n_pad * c_out                        # resident XW (read once)
            + 4 * c_out                                # bias
            + out_bytes * n_pad * c_out,               # output writeback
        ),
    )(a_hat_bf16, xw_bf16, bias_f32)


def gcn_layer(a_hat_bf16, x, w_bf16, b_f32, *, tile_m, tile_k, apply_relu,
              out_dtype):
    """One GCNConv layer on padded operands: A_hat @ (X @ W) + b [+ ReLU]."""
    xw = _linear(x, w_bf16, tile_m=tile_m)
    bias = b_f32.reshape(1, -1).astype(jnp.float32)
    return _aggregate(a_hat_bf16, xw, bias, tile_m=tile_m, tile_k=tile_k,
                      apply_relu=apply_relu, out_dtype=out_dtype)


# ---------------------------------------------------------------------------
# Graph preprocessing (glue): dense D^{-1/2} (A + I) D^{-1/2}  -> bf16
# Matches torch_geometric.nn.conv.gcn_conv.gcn_norm with add_self_loops=True.
# ---------------------------------------------------------------------------
def build_normalized_adjacency_bf16(edge_index, num_nodes):
    src = edge_index[0]
    dst = edge_index[1]
    a = jnp.zeros((num_nodes, num_nodes), dtype=jnp.float32)
    # A[i, j] accumulates edges j -> i (duplicates add, like scatter_add)
    a = a.at[dst, src].add(1.0)
    a = a + jnp.eye(num_nodes, dtype=jnp.float32)          # self loops
    deg = a.sum(axis=1)                                     # in-degree + 1
    deg_inv_sqrt = jnp.where(deg > 0, 1.0 / jnp.sqrt(deg), 0.0)
    a = deg_inv_sqrt[:, None] * a * deg_inv_sqrt[None, :]
    # TODO(synk): block-sparse / scalar-prefetch adjacency for large graphs
    # (avoid the dense N x N entirely).
    return a.astype(jnp.bfloat16)


# ---------------------------------------------------------------------------
# Full GCN forward:  relu(GCNConv1(x)) -> GCNConv2
# ---------------------------------------------------------------------------
def gcn_forward(x, edge_index, params, *, max_tile=1024):
    n, c_in = x.shape
    hidden = params["w1"].shape[1]
    c_out = params["w2"].shape[1]

    # Pad N only to a multiple of 128 (no tile-multiple blowup); pick the
    # largest tile (<=1024, multiple of 128) dividing n_pad. Channel dims are
    # padded to multiples of 128 so stores stay lane-dense / unmasked.
    n_pad = _round_up(n, 128)
    tile = _pick_tile(n_pad, max_tile)
    c_in_p = _round_up(c_in, 128)
    hid_p = _round_up(hidden, 128)
    out_p = _round_up(c_out, 128)

    a_hat = build_normalized_adjacency_bf16(edge_index, n)
    a_pad = jnp.zeros((n_pad, n_pad), jnp.bfloat16).at[:n, :n].set(a_hat)
    x_pad = jnp.zeros((n_pad, c_in_p), jnp.float32).at[:n, :c_in].set(x)
    w1 = (
        jnp.zeros((c_in_p, hid_p), jnp.bfloat16)
        .at[:c_in, :hidden].set(params["w1"].astype(jnp.bfloat16))
    )
    b1 = jnp.zeros((hid_p,), jnp.float32).at[:hidden].set(params["b1"])
    w2 = (
        jnp.zeros((hid_p, out_p), jnp.bfloat16)
        .at[:hidden, :c_out].set(params["w2"].astype(jnp.bfloat16))
    )
    b2 = jnp.zeros((out_p,), jnp.float32).at[:c_out].set(params["b2"])

    # Layer 1: bf16 output (half the inter-layer writeback), fused ReLU.
    h = gcn_layer(a_pad, x_pad, w1, b1, tile_m=tile, tile_k=tile,
                  apply_relu=True, out_dtype=jnp.bfloat16)
    # Layer 2: f32 output, accumulated directly into the resident output.
    out = gcn_layer(a_pad, h, w2, b2, tile_m=tile, tile_k=tile,
                    apply_relu=False, out_dtype=jnp.float32)
    # Drop node / channel padding.
    return out[:n, :c_out]


def init_params(key, in_channels, hidden_channels, out_channels):
    k1, k2 = jax.random.split(key)

    def glorot(k, fan_in, fan_out):
        scale = jnp.sqrt(6.0 / (fan_in + fan_out))
        return jax.random.uniform(
            k, (fan_in, fan_out), jnp.float32, -scale, scale
        )

    return {
        "w1": glorot(k1, in_channels, hidden_channels),
        "b1": jnp.zeros((hidden_channels,), jnp.float32),
        "w2": glorot(k2, hidden_channels, out_channels),
        "b2": jnp.zeros((out_channels,), jnp.float32),
    }


if __name__ == "__main__":
    key = jax.random.PRNGKey(0)
    k_x, k_e, k_p = jax.random.split(key, 3)

    num_nodes = 16
    in_channels = 8
    hidden_channels = 32
    out_channels = 16
    num_edges = 40

    x = jax.random.normal(k_x, (num_nodes, in_channels), dtype=jnp.float32)
    edge_index = jax.random.randint(
        k_e, (2, num_edges), 0, num_nodes, dtype=jnp.int32
    )
    params = init_params(k_p, in_channels, hidden_channels, out_channels)

    out = jax.jit(gcn_forward)(x, edge_index, params)
    jax.block_until_ready(out)

    assert out.shape == (num_nodes, out_channels)
    assert out.dtype == jnp.float32
    assert bool(jnp.all(jnp.isfinite(out)))
    print("KERNEL_OK")
</pallas_src>

<mosaic_0001>
module attributes {stable_mosaic.version = 11 : i64} {
  func.func @_xw_kernel(%arg0: i32, %arg1: memref<128x128xbf16, #tpu.memory_space<vmem>>, %arg2: memref<128x128xbf16, #tpu.memory_space<vmem>>, %arg3: memref<128x128xbf16, #tpu.memory_space<vmem>>) attributes {dimension_semantics = [#tpu.dimension_semantics<parallel>], iteration_bounds = array<i64: 1>, scalar_prefetch = 0 : i64, scratch_operands = 0 : i64, tpu.core_type = #tpu.core_type<tc>, window_params = [{transform_indices = @transform_0, window_bounds = array<i64: 128, 128>}, {pipeline_mode = #tpu.pipeline_mode<synchronous>, transform_indices = @transform_1, window_bounds = array<i64: 128, 128>}, {transform_indices = @transform_2, window_bounds = array<i64: 128, 128>}]} {
    %c0 = arith.constant 0 : index
    %c0_0 = arith.constant 0 : index
    %0 = vector.load %arg1[%c0, %c0_0] : memref<128x128xbf16, #tpu.memory_space<vmem>>, vector<128x128xbf16>
    %c0_1 = arith.constant 0 : index
    %c0_2 = arith.constant 0 : index
    %1 = vector.load %arg2[%c0_1, %c0_2] : memref<128x128xbf16, #tpu.memory_space<vmem>>, vector<128x128xbf16>
    %cst = arith.constant dense<0.000000e+00> : vector<128x128xf32>
    %2 = tpu.matmul %0, %1, %cst {dimension_numbers = #tpu.dot_dimension_numbers<[1], [0], [0], [1], [0, 0, 1, 1], [], []>} : vector<128x128xbf16>, vector<128x128xbf16>, vector<128x128xf32> -> vector<128x128xf32>
    %3 = arith.truncf %2 : vector<128x128xf32> to vector<128x128xbf16>
    %c0_3 = arith.constant 0 : index
    %c0_4 = arith.constant 0 : index
    %4 = vector.load %arg3[%c0_3, %c0_4] : memref<128x128xbf16, #tpu.memory_space<vmem>>, vector<128x128xbf16>
    tpu.vector_store %arg3[%c0_3, %c0_4], %3 {strides = array<i32>} : memref<128x128xbf16, #tpu.memory_space<vmem>>, vector<128x128xbf16>,
    return
  }
  func.func @transform_0(%arg0: i32) -> (i32, i32) {
    %c0_i32 = arith.constant 0 : i32
    %c0_i32_0 = arith.constant 0 : i32
    return %arg0, %c0_i32 : i32, i32
  }
  func.func @transform_1(%arg0: i32) -> (i32, i32) {
    %c0_i32 = arith.constant 0 : i32
    %c0_i32_0 = arith.constant 0 : i32
    %c0_i32_1 = arith.constant 0 : i32
    return %c0_i32, %c0_i32_0 : i32, i32
  }
  func.func @transform_2(%arg0: i32) -> (i32, i32) {
    %c0_i32 = arith.constant 0 : i32
    %c0_i32_0 = arith.constant 0 : i32
    return %arg0, %c0_i32 : i32, i32
  }
}

module attributes {stable_mosaic.version = 11 : i64} {
  func.func @_xw_kernel(%arg0: i32, %arg1: memref<128x128xf32, #tpu.memory_space<vmem>>, %arg2: memref<128x128xbf16, #tpu.memory_space<vmem>>, %arg3: memref<128x128xbf16, #tpu.memory_space<vmem>>) attributes {dimension_semantics = [#tpu.dimension_semantics<parallel>], iteration_bounds = array<i64: 1>, scalar_prefetch = 0 : i64, scratch_operands = 0 : i64, tpu.core_type = #tpu.core_type<tc>, window_params = [{transform_indices = @transform_0, window_bounds = array<i64: 128, 128>}, {pipeline_mode = #tpu.pipeline_mode<synchronous>, transform_indices = @transform_1, window_bounds = array<i64: 128, 128>}, {transform_indices = @transform_2, window_bounds = array<i64: 128, 128>}]} {
    %c0 = arith.constant 0 : index
    %c0_0 = arith.constant 0 : index
    %0 = vector.load %arg1[%c0, %c0_0] : memref<128x128xf32, #tpu.memory_space<vmem>>, vector<128x128xf32>
    %1 = arith.truncf %0 : vector<128x128xf32> to vector<128x128xbf16>
    %c0_1 = arith.constant 0 : index
    %c0_2 = arith.constant 0 : index
    %2 = vector.load %arg2[%c0_1, %c0_2] : memref<128x128xbf16, #tpu.memory_space<vmem>>, vector<128x128xbf16>
    %cst = arith.constant dense<0.000000e+00> : vector<128x128xf32>
    %3 = tpu.matmul %1, %2, %cst {dimension_numbers = #tpu.dot_dimension_numbers<[1], [0], [0], [1], [0, 0, 1, 1], [], []>} : vector<128x128xbf16>, vector<128x128xbf16>, vector<128x128xf32> -> vector<128x128xf32>
    %4 = arith.truncf %3 : vector<128x128xf32> to vector<128x128xbf16>
    %c0_3 = arith.constant 0 : index
    %c0_4 = arith.constant 0 : index
    %5 = vector.load %arg3[%c0_3, %c0_4] : memref<128x128xbf16, #tpu.memory_space<vmem>>, vector<128x128xbf16>
    tpu.vector_store %arg3[%c0_3, %c0_4], %4 {strides = array<i32>} : memref<128x128xbf16, #tpu.memory_space<vmem>>, vector<128x128xbf16>,
    return
  }
  func.func @transform_0(%arg0: i32) -> (i32, i32) {
    %c0_i32 = arith.constant 0 : i32
    %c0_i32_0 = arith.constant 0 : i32
    return %arg0, %c0_i32 : i32, i32
  }
  func.func @transform_1(%arg0: i32) -> (i32, i32) {
    %c0_i32 = arith.constant 0 : i32
    %c0_i32_0 = arith.constant 0 : i32
    %c0_i32_1 = arith.constant 0 : i32
    return %c0_i32, %c0_i32_0 : i32, i32
  }
  func.func @transform_2(%arg0: i32) -> (i32, i32) {
    %c0_i32 = arith.constant 0 : i32
    %c0_i32_0 = arith.constant 0 : i32
    return %arg0, %c0_i32 : i32, i32
  }
}

module attributes {stable_mosaic.version = 11 : i64} {
  func.func @_aggregate_bf16_kernel(%arg0: i32, %arg1: i32, %arg2: memref<128x128xbf16, #tpu.memory_space<vmem>>, %arg3: memref<128x128xbf16, #tpu.memory_space<vmem>>, %arg4: memref<1x128xf32, #tpu.memory_space<vmem>>, %arg5: memref<128x128xbf16, #tpu.memory_space<vmem>>, %arg6: memref<128x128xf32, #tpu.memory_space<vmem>>) attributes {dimension_semantics = [#tpu.dimension_semantics<parallel>, #tpu.dimension_semantics<arbitrary>], iteration_bounds = array<i64: 1, 1>, scalar_prefetch = 0 : i64, scratch_operands = 1 : i64, tpu.core_type = #tpu.core_type<tc>, window_params = [{transform_indices = @transform_0, window_bounds = array<i64: 128, 128>}, {pipeline_mode = #tpu.pipeline_mode<synchronous>, transform_indices = @transform_1, window_bounds = array<i64: 128, 128>}, {pipeline_mode = #tpu.pipeline_mode<synchronous>, transform_indices = @transform_2, window_bounds = array<i64: 1, 128>}, {transform_indices = @transform_3, window_bounds = array<i64: 128, 128>}]} {
    %c0_i32 = arith.constant 0 : i32
    %0 = arith.cmpi eq, %arg1, %c0_i32 : i32
    %1 = arith.extui %0 : i1 to i32
    %c0_i32_0 = arith.constant 0 : i32
    %2 = arith.cmpi ne, %1, %c0_i32_0 : i32
    scf.if %2 {
      %cst_9 = arith.constant 0.000000e+00 : f32
      %15 = vector.broadcast %cst_9 : f32 to vector<128x128xf32>
      %c0_10 = arith.constant 0 : index
      %c0_11 = arith.constant 0 : index
      %16 = vector.load %arg6[%c0_10, %c0_11] : memref<128x128xf32, #tpu.memory_space<vmem>>, vector<128x128xf32>
      tpu.vector_store %arg6[%c0_10, %c0_11], %15 {strides = array<i32>} : memref<128x128xf32, #tpu.memory_space<vmem>>, vector<128x128xf32>,
    } else {
    }
    %c128_i32 = arith.constant 128 : i32
    %3 = arith.muli %arg1, %c128_i32 : i32
    %4 = tpu.assume_multiple %3, 128 : i32
    %c0 = arith.constant 0 : index
    %c0_1 = arith.constant 0 : index
    %5 = vector.load %arg6[%c0, %c0_1] : memref<128x128xf32, #tpu.memory_space<vmem>>, vector<128x128xf32>
    %c0_2 = arith.constant 0 : index
    %c0_3 = arith.constant 0 : index
    %6 = vector.load %arg2[%c0_2, %c0_3] : memref<128x128xbf16, #tpu.memory_space<vmem>>, vector<128x128xbf16>
    %7 = arith.index_cast %4 : i32 to index
    %c0_4 = arith.constant 0 : index
    %8 = vector.load %arg3[%7, %c0_4] : memref<128x128xbf16, #tpu.memory_space<vmem>>, vector<128x128xbf16>
    %cst = arith.constant dense<0.000000e+00> : vector<128x128xf32>
    %9 = tpu.matmul %6, %8, %cst {dimension_numbers = #tpu.dot_dimension_numbers<[1], [0], [0], [1], [0, 0, 1, 1], [], []>} : vector<128x128xbf16>, vector<128x128xbf16>, vector<128x128xf32> -> vector<128x128xf32>
    %10 = arith.addf %5, %9 : vector<128x128xf32>
    %c0_5 = arith.constant 0 : index
    %c0_6 = arith.constant 0 : index
    %11 = vector.load %arg6[%c0_5, %c0_6] : memref<128x128xf32, #tpu.memory_space<vmem>>, vector<128x128xf32>
    tpu.vector_store %arg6[%c0_5, %c0_6], %10 {strides = array<i32>} : memref<128x128xf32, #tpu.memory_space<vmem>>, vector<128x128xf32>,
    %c0_i32_7 = arith.constant 0 : i32
    %12 = arith.cmpi eq, %arg1, %c0_i32_7 : i32
    %13 = arith.extui %12 : i1 to i32
    %c0_i32_8 = arith.constant 0 : i32
    %14 = arith.cmpi ne, %13, %c0_i32_8 : i32
    scf.if %14 {
      %c0_9 = arith.constant 0 : index
      %c0_10 = arith.constant 0 : index
      %15 = vector.load %arg6[%c0_9, %c0_10] : memref<128x128xf32, #tpu.memory_space<vmem>>, vector<128x128xf32>
      %c0_11 = arith.constant 0 : index
      %c0_12 = arith.constant 0 : index
      %16 = vector.load %arg4[%c0_11, %c0_12] : memref<1x128xf32, #tpu.memory_space<vmem>>, vector<1x128xf32>
      %17 = vector.broadcast %16 : vector<1x128xf32> to vector<128x128xf32>
      %18 = arith.addf %15, %17 : vector<128x128xf32>
      %cst_13 = arith.constant 0.000000e+00 : f32
      %19 = vector.broadcast %cst_13 : f32 to vector<128x128xf32>
      %20 = arith.maximumf %18, %19 : vector<128x128xf32>
      %21 = arith.truncf %20 : vector<128x128xf32> to vector<128x128xbf16>
      %c0_14 = arith.constant 0 : index
      %c0_15 = arith.constant 0 : index
      %22 = vector.load %arg5[%c0_14, %c0_15] : memref<128x128xbf16, #tpu.memory_space<vmem>>, vector<128x128xbf16>
      tpu.vector_store %arg5[%c0_14, %c0_15], %21 {strides = array<i32>} : memref<128x128xbf16, #tpu.memory_space<vmem>>, vector<128x128xbf16>,
    } else {
    }
    return
  }
  func.func @transform_0(%arg0: i32, %arg1: i32) -> (i32, i32) {
    %c0_i32 = arith.constant 0 : i32
    return %arg0, %arg1 : i32, i32
  }
  func.func @transform_1(%arg0: i32, %arg1: i32) -> (i32, i32) {
    %c0_i32 = arith.constant 0 : i32
    %c0_i32_0 = arith.constant 0 : i32
    %c0_i32_1 = arith.constant 0 : i32
    return %c0_i32, %c0_i32_0 : i32, i32
  }
  func.func @transform_2(%arg0: i32, %arg1: i32) -> (i32, i32) {
    %c0_i32 = arith.constant 0 : i32
    %c0_i32_0 = arith.constant 0 : i32
    %c0_i32_1 = arith.constant 0 : i32
    return %c0_i32, %c0_i32_0 : i32, i32
  }
  func.func @transform_3(%arg0: i32, %arg1: i32) -> (i32, i32) {
    %c0_i32 = arith.constant 0 : i32
    %c0_i32_0 = arith.constant 0 : i32
    return %arg0, %c0_i32 : i32, i32
  }
}

module attributes {stable_mosaic.version = 11 : i64} {
  func.func @_aggregate_f32_kernel(%arg0: i32, %arg1: i32, %arg2: memref<128x128xbf16, #tpu.memory_space<vmem>>, %arg3: memref<128x128xbf16, #tpu.memory_space<vmem>>, %arg4: memref<1x128xf32, #tpu.memory_space<vmem>>, %arg5: memref<128x128xf32, #tpu.memory_space<vmem>>) attributes {dimension_semantics = [#tpu.dimension_semantics<parallel>, #tpu.dimension_semantics<arbitrary>], iteration_bounds = array<i64: 1, 1>, scalar_prefetch = 0 : i64, scratch_operands = 0 : i64, tpu.core_type = #tpu.core_type<tc>, window_params = [{transform_indices = @transform_0, window_bounds = array<i64: 128, 128>}, {pipeline_mode = #tpu.pipeline_mode<synchronous>, transform_indices = @transform_1, window_bounds = array<i64: 128, 128>}, {pipeline_mode = #tpu.pipeline_mode<synchronous>, transform_indices = @transform_2, window_bounds = array<i64: 1, 128>}, {transform_indices = @transform_3, window_bounds = array<i64: 128, 128>}]} {
    %c0_i32 = arith.constant 0 : i32
    %0 = arith.cmpi eq, %arg1, %c0_i32 : i32
    %1 = arith.extui %0 : i1 to i32
    %c0_i32_0 = arith.constant 0 : i32
    %2 = arith.cmpi ne, %1, %c0_i32_0 : i32
    scf.if %2 {
      %cst_9 = arith.constant 0.000000e+00 : f32
      %15 = vector.broadcast %cst_9 : f32 to vector<128x128xf32>
      %c0_10 = arith.constant 0 : index
      %c0_11 = arith.constant 0 : index
      %16 = vector.load %arg5[%c0_10, %c0_11] : memref<128x128xf32, #tpu.memory_space<vmem>>, vector<128x128xf32>
      tpu.vector_store %arg5[%c0_10, %c0_11], %15 {strides = array<i32>} : memref<128x128xf32, #tpu.memory_space<vmem>>, vector<128x128xf32>,
    } else {
    }
    %c128_i32 = arith.constant 128 : i32
    %3 = arith.muli %arg1, %c128_i32 : i32
    %4 = tpu.assume_multiple %3, 128 : i32
    %c0 = arith.constant 0 : index
    %c0_1 = arith.constant 0 : index
    %5 = vector.load %arg5[%c0, %c0_1] : memref<128x128xf32, #tpu.memory_space<vmem>>, vector<128x128xf32>
    %c0_2 = arith.constant 0 : index
    %c0_3 = arith.constant 0 : index
    %6 = vector.load %arg2[%c0_2, %c0_3] : memref<128x128xbf16, #tpu.memory_space<vmem>>, vector<128x128xbf16>
    %7 = arith.index_cast %4 : i32 to index
    %c0_4 = arith.constant 0 : index
    %8 = vector.load %arg3[%7, %c0_4] : memref<128x128xbf16, #tpu.memory_space<vmem>>, vector<128x128xbf16>
    %cst = arith.constant dense<0.000000e+00> : vector<128x128xf32>
    %9 = tpu.matmul %6, %8, %cst {dimension_numbers = #tpu.dot_dimension_numbers<[1], [0], [0], [1], [0, 0, 1, 1], [], []>} : vector<128x128xbf16>, vector<128x128xbf16>, vector<128x128xf32> -> vector<128x128xf32>
    %10 = arith.addf %5, %9 : vector<128x128xf32>
    %c0_5 = arith.constant 0 : index
    %c0_6 = arith.constant 0 : index
    %11 = vector.load %arg5[%c0_5, %c0_6] : memref<128x128xf32, #tpu.memory_space<vmem>>, vector<128x128xf32>
    tpu.vector_store %arg5[%c0_5, %c0_6], %10 {strides = array<i32>} : memref<128x128xf32, #tpu.memory_space<vmem>>, vector<128x128xf32>,
    %c0_i32_7 = arith.constant 0 : i32
    %12 = arith.cmpi eq, %arg1, %c0_i32_7 : i32
    %13 = arith.extui %12 : i1 to i32
    %c0_i32_8 = arith.constant 0 : i32
    %14 = arith.cmpi ne, %13, %c0_i32_8 : i32
    scf.if %14 {
      %c0_9 = arith.constant 0 : index
      %c0_10 = arith.constant 0 : index
      %15 = vector.load %arg5[%c0_9, %c0_10] : memref<128x128xf32, #tpu.memory_space<vmem>>, vector<128x128xf32>
      %c0_11 = arith.constant 0 : index
      %c0_12 = arith.constant 0 : index
      %16 = vector.load %arg4[%c0_11, %c0_12] : memref<1x128xf32, #tpu.memory_space<vmem>>, vector<1x128xf32>
      %17 = vector.broadcast %16 : vector<1x128xf32> to vector<128x128xf32>
      %18 = arith.addf %15, %17 : vector<128x128xf32>
      %c0_13 = arith.constant 0 : index
      %c0_14 = arith.constant 0 : index
      %19 = vector.load %arg5[%c0_13, %c0_14] : memref<128x128xf32, #tpu.memory_space<vmem>>, vector<128x128xf32>
      tpu.vector_store %arg5[%c0_13, %c0_14], %18 {strides = array<i32>} : memref<128x128xf32, #tpu.memory_space<vmem>>, vector<128x128xf32>,
    } else {
    }
    return
  }
  func.func @transform_0(%arg0: i32, %arg1: i32) -> (i32, i32) {
    %c0_i32 = arith.constant 0 : i32
    return %arg0, %arg1 : i32, i32
  }
  func.func @transform_1(%arg0: i32, %arg1: i32) -> (i32, i32) {
    %c0_i32 = arith.constant 0 : i32
    %c0_i32_0 = arith.constant 0 : i32
    %c0_i32_1 = arith.constant 0 : i32
    return %c0_i32, %c0_i32_0 : i32, i32
  }
  func.func @transform_2(%arg0: i32, %arg1: i32) -> (i32, i32) {
    %c0_i32 = arith.constant 0 : i32
    %c0_i32_0 = arith.constant 0 : i32
    %c0_i32_1 = arith.constant 0 : i32
    return %c0_i32, %c0_i32_0 : i32, i32
  }
  func.func @transform_3(%arg0: i32, %arg1: i32) -> (i32, i32) {
    %c0_i32 = arith.constant 0 : i32
    %c0_i32_0 = arith.constant 0 : i32
    return %arg0, %c0_i32 : i32, i32
  }
}

</mosaic_0001>

<bundles_post_ra>
// kernel: gcn_forward.4
= control target key start
LH: loop header
LB: loop body
LE: loop exit
PB: predicated region body
PF: predicated region fallthrough
CT: control target
= control target key end

     0   :  { %s551_s1 = inlined_call_operand.vmem [shape: bf16[128,128], index: 1, kind: input, shape index: {}]   ;;  %s552_s0 = inlined_call_operand.vmem [shape: f32[128,128], index: 0, kind: input, shape index: {}]   ;;  %s553_s2 = inlined_call_operand.vmem [shape: bf16[128,128], index: 2, kind: output, shape index: {}]  }
   0x1   :  { %v432_v0 = vld [vmem:[%s551_s1] sm:$0xff]   ;;  %v433_v1 = vld [vmem:[%s551_s1 + $0x8] sm:$0xff]   ;;  %v434_v2 = vld [vmem:[%s551_s1 + $0x10] sm:$0xff]  }
   0x2   :  { %384 = vmatprep.subr.bf16.mxu0 %v432_v0  ;;  %416 = vmatprep.subr.bf16.mxu1 %v432_v0  ;;  %v435_v3 = vld [vmem:[%s551_s1 + $0x18] sm:$0xff]   ;;  %v12_v4 = vld [vmem:[%s552_s0] sm:$0xff]  ;;  %v13_v5 = vld [vmem:[%s552_s0 + $0x8] sm:$0xff] }
   0x3   :  { %385 = vmatpush3.bf16.msra.mxu0 %v432_v0  ;;  %424 = vmatpush3.bf16.msra.mxu1 %v432_v0  ;;  %v20_v6 = vld [vmem:[%s552_s0 + $0x40] sm:$0xff]  ;;  %v28_v7 = vpack.c.bf16 %v13_v5, %v12_v4  ;;  %v21_v8 = vld [vmem:[%s552_s0 + $0x48] sm:$0xff]  ;;  %v438_v12 = vld [vmem:[%s551_s1 + $0x30] sm:$0xff]  }
   0x4   :  { %386 = vmatprep.subr.bf16.mxu0 %v433_v1  ;;  %417 = vmatprep.subr.bf16.mxu1 %v433_v1  ;;  %v32_v9 = vpack.c.bf16 %v21_v8, %v20_v6  ;;  %v436_v10 = vld [vmem:[%s551_s1 + $0x20] sm:$0xff]   ;;  %v437_v11 = vld [vmem:[%s551_s1 + $0x28] sm:$0xff]   ;;  %v439_v13 = vld [vmem:[%s551_s1 + $0x38] sm:$0xff]  }
   0x5   :  { %400 = vmatprep.mubr.bf16.mxu0 %v28_v7  ;;  %v14_v14 = vld [vmem:[%s552_s0 + $0x10] sm:$0xff]  ;;  %v15_v15 = vld [vmem:[%s552_s0 + $0x18] sm:$0xff]  ;;  %v16_v18 = vld [vmem:[%s552_s0 + $0x20] sm:$0xff] }
   0x6   :  { %408 = vmatprep.mubr.bf16.mxu1 %v32_v9  ;;  %v22_v16 = vld [vmem:[%s552_s0 + $0x50] sm:$0xff]  ;;  %v23_v17 = vld [vmem:[%s552_s0 + $0x58] sm:$0xff]  ;;  %v17_v19 = vld [vmem:[%s552_s0 + $0x28] sm:$0xff]  ;;  %v29_v22 = vpack.c.bf16 %v15_v15, %v14_v14 }
   0x7   :  { %387 = vmatpush3.bf16.msra.mxu0 %v433_v1  ;;  %425 = vmatpush3.bf16.msra.mxu1 %v433_v1  ;;  %v24_v20 = vld [vmem:[%s552_s0 + $0x60] sm:$0xff]  ;;  %v25_v21 = vld [vmem:[%s552_s0 + $0x68] sm:$0xff]  ;;  %v33_v23 = vpack.c.bf16 %v23_v17, %v22_v16  ;;  %v30_v24 = vpack.c.bf16 %v17_v19, %v16_v18  ;;  %v18_v26 = vld [vmem:[%s552_s0 + $0x30] sm:$0xff] }
   0x8   :  { %388 = vmatprep.subr.bf16.mxu0 %v434_v2  ;;  %418 = vmatprep.subr.bf16.mxu1 %v434_v2  ;;  %v34_v25 = vpack.c.bf16 %v25_v21, %v24_v20  ;;  %v19_v27 = vld [vmem:[%s552_s0 + $0x38] sm:$0xff]  ;;  %v26_v28 = vld [vmem:[%s552_s0 + $0x70] sm:$0xff] }
   0x9   :  { %v27_v29 = vld [vmem:[%s552_s0 + $0x78] sm:$0xff]  ;;  %v31_v30 = vpack.c.bf16 %v19_v27, %v18_v26 }
   0xa   :  { %v35_v31 = vpack.c.bf16 %v27_v29, %v26_v28 }
   0xb   :  { %389 = vmatpush3.bf16.msra.mxu0 %v434_v2  ;;  %426 = vmatpush3.bf16.msra.mxu1 %v434_v2 }
   0xc   :  { %390 = vmatprep.subr.bf16.mxu0 %v435_v3  ;;  %419 = vmatprep.subr.bf16.mxu1 %v435_v3 }
   0xf   :  { %391 = vmatpush3.bf16.msra.mxu0 %v435_v3  ;;  %427 = vmatpush3.bf16.msra.mxu1 %v435_v3 }
  0x10   :  { %392 = vmatprep.subr.bf16.mxu0 %v436_v10  ;;  %420 = vmatprep.subr.bf16.mxu1 %v436_v10 }
  0x13   :  { %393 = vmatpush3.bf16.msra.mxu0 %v436_v10  ;;  %428 = vmatpush3.bf16.msra.mxu1 %v436_v10 }
  0x14   :  { %394 = vmatprep.subr.bf16.mxu0 %v437_v11  ;;  %421 = vmatprep.subr.bf16.mxu1 %v437_v11 }
  0x17   :  { %395 = vmatpush3.bf16.msra.mxu0 %v437_v11  ;;  %429 = vmatpush3.bf16.msra.mxu1 %v437_v11 }
  0x18   :  { %396 = vmatprep.subr.bf16.mxu0 %v438_v12  ;;  %422 = vmatprep.subr.bf16.mxu1 %v438_v12 }
  0x1b   :  { %397 = vmatpush3.bf16.msra.mxu0 %v438_v12  ;;  %430 = vmatpush3.bf16.msra.mxu1 %v438_v12 }
  0x1c   :  { %398 = vmatprep.subr.bf16.mxu0 %v439_v13  ;;  %423 = vmatprep.subr.bf16.mxu1 %v439_v13 }
  0x1f   :  { %399 = vmatpush3.bf16.msra.mxu0 %v439_v13  ;;  %431 = vmatpush3.bf16.msra.mxu1 %v439_v13 }
  0x22   :  { %401 = vmatmul.mubr.bf16.vlgmr.msra.gmra.mrb[0].mxu0 %v29_v22  ;;  %409 = vmatmul.mubr.bf16.vlgmr.msra.gmra.mrb[0].mxu1 %v33_v23 }
  0x23   :  { %404 = vmatprep.mubr.bf16.mxu0 %v30_v24  ;;  %412 = vmatprep.mubr.bf16.mxu1 %v34_v25 }
  0x2a   :  { %405 = vmatmul.mubr.bf16.gmra.mrb[4].mxu0 %v31_v30  ;;  %413 = vmatmul.mubr.bf16.gmra.mrb[4].mxu1 %v35_v31 }
  0xf5   :  { %v402_v32 = vpop.f32.mrb[0].mxu0  ;;  %v410_v33 = vpop.f32.mrb[0].mxu1 }
  0xf6   :  { %v134_v34 = vpop.f32.mrb[1].mxu0  ;;  %v166_v35 = vpop.f32.mrb[1].mxu1 }
  0xf7   :  { %v403_v36 = vpop.f32.mrb[2].mxu0  ;;  %v411_v37 = vpop.f32.mrb[2].mxu1 }
  0xf8   :  { %v329_v38 = vpack.c.bf16 %v403_v36, %v402_v32  ;;  %v349_v39 = vpack.c.bf16 %v411_v37, %v410_v33  ;;  %v137_v40 = vpop.f32.mrb[3].mxu0  ;;  %v169_v41 = vpop.f32.mrb[3].mxu1 }
  0xf9   :  { %v324_v42 = vpack.c.bf16 %v137_v40, %v134_v34  ;;  %v344_v43 = vpack.c.bf16 %v169_v41, %v166_v35 }
  0xfa   :  { %361 = vst [vmem:[%s553_s2 + $0x8] sm:$0xff] %v329_v38   ;;  %365 = vst [vmem:[%s553_s2 + $0x28] sm:$0xff] %v349_v39  }
  0xfb   :  { %325 = vst [vmem:[%s553_s2] sm:$0xff] %v324_v42   ;;  %364 = vst [vmem:[%s553_s2 + $0x20] sm:$0xff] %v344_v43  }
  0xfd   :  { %v406_v44 = vpop.f32.mrb[4].mxu0  ;;  %v414_v45 = vpop.f32.mrb[4].mxu1 }
  0xfe   :  { %v150_v46 = vpop.f32.mrb[5].mxu0  ;;  %v182_v47 = vpop.f32.mrb[5].mxu1 }
  0xff   :  { %v407_v48 = vpop.f32.mrb[6].mxu0  ;;  %v415_v49 = vpop.f32.mrb[6].mxu1 }
 0x100   :  { %v339_v50 = vpack.c.bf16 %v407_v48, %v406_v44  ;;  %v359_v51 = vpack.c.bf16 %v415_v49, %v414_v45  ;;  %v153_v52 = vpop.f32.mrb[7].mxu0  ;;  %v185_v53 = vpop.f32.mrb[7].mxu1 }
 0x101   :  { %v334_v54 = vpack.c.bf16 %v153_v52, %v150_v46  ;;  %v354_v55 = vpack.c.bf16 %v185_v53, %v182_v47 }
 0x102   :  { %363 = vst [vmem:[%s553_s2 + $0x18] sm:$0xff] %v339_v50   ;;  %367 = vst [vmem:[%s553_s2 + $0x38] sm:$0xff] %v359_v51  }
 0x103   :  { %362 = vst [vmem:[%s553_s2 + $0x10] sm:$0xff] %v334_v54   ;;  %366 = vst [vmem:[%s553_s2 + $0x30] sm:$0xff] %v354_v55  }

// kernel: gcn_forward.6
= control target key start
LH: loop header
LB: loop body
LE: loop exit
PB: predicated region body
PF: predicated region fallthrough
CT: control target
= control target key end

     0   :  { %s583_s1 = inlined_call_operand.vmem [shape: bf16[128,128], index: 1, kind: input, shape index: {}]   ;;  %s584_s0 = inlined_call_operand.vmem [shape: bf16[128,128], index: 0, kind: input, shape index: {}]   ;;  %s585_s2 = inlined_call_operand.vmem [shape: bf16[128,128], index: 2, kind: output, shape index: {}]  }
   0x1   :  { %v480_v0 = vld [vmem:[%s583_s1] sm:$0xff]   ;;  %v481_v1 = vld [vmem:[%s583_s1 + $0x8] sm:$0xff]   ;;  %v482_v2 = vld [vmem:[%s583_s1 + $0x10] sm:$0xff]  }
   0x2   :  { %432 = vmatprep.subr.bf16.mxu0 %v480_v0  ;;  %464 = vmatprep.subr.bf16.mxu1 %v480_v0  ;;  %v483_v3 = vld [vmem:[%s583_s1 + $0x18] sm:$0xff]   ;;  %v488_v4 = vld [vmem:[%s584_s0] sm:$0xff]   ;;  %v485_v7 = vld [vmem:[%s583_s1 + $0x28] sm:$0xff]  }
   0x3   :  { %433 = vmatpush3.bf16.msra.mxu0 %v480_v0  ;;  %472 = vmatpush3.bf16.msra.mxu1 %v480_v0  ;;  %v489_v5 = vld [vmem:[%s584_s0 + $0x20] sm:$0xff]   ;;  %v486_v8 = vld [vmem:[%s583_s1 + $0x30] sm:$0xff]   ;;  %v487_v9 = vld [vmem:[%s583_s1 + $0x38] sm:$0xff]  }
   0x4   :  { %434 = vmatprep.subr.bf16.mxu0 %v481_v1  ;;  %465 = vmatprep.subr.bf16.mxu1 %v481_v1  ;;  %v484_v6 = vld [vmem:[%s583_s1 + $0x20] sm:$0xff]   ;;  %v490_v10 = vld [vmem:[%s584_s0 + $0x8] sm:$0xff]   ;;  %v492_v12 = vld [vmem:[%s584_s0 + $0x10] sm:$0xff]  }
   0x5   :  { %448 = vmatprep.mubr.bf16.mxu0 %v488_v4  ;;  %456 = vmatprep.mubr.bf16.mxu1 %v489_v5  ;;  %v491_v11 = vld [vmem:[%s584_s0 + $0x28] sm:$0xff]   ;;  %v493_v13 = vld [vmem:[%s584_s0 + $0x30] sm:$0xff]   ;;  %v494_v14 = vld [vmem:[%s584_s0 + $0x18] sm:$0xff]  }
   0x6   :  { %v495_v15 = vld [vmem:[%s584_s0 + $0x38] sm:$0xff]  }
   0x7   :  { %435 = vmatpush3.bf16.msra.mxu0 %v481_v1  ;;  %473 = vmatpush3.bf16.msra.mxu1 %v481_v1 }
   0x8   :  { %436 = vmatprep.subr.bf16.mxu0 %v482_v2  ;;  %466 = vmatprep.subr.bf16.mxu1 %v482_v2 }
   0xb   :  { %437 = vmatpush3.bf16.msra.mxu0 %v482_v2  ;;  %474 = vmatpush3.bf16.msra.mxu1 %v482_v2 }
   0xc   :  { %438 = vmatprep.subr.bf16.mxu0 %v483_v3  ;;  %467 = vmatprep.subr.bf16.mxu1 %v483_v3 }
   0xf   :  { %439 = vmatpush3.bf16.msra.mxu0 %v483_v3  ;;  %475 = vmatpush3.bf16.msra.mxu1 %v483_v3 }
  0x10   :  { %440 = vmatprep.subr.bf16.mxu0 %v484_v6  ;;  %468 = vmatprep.subr.bf16.mxu1 %v484_v6 }
  0x13   :  { %441 = vmatpush3.bf16.msra.mxu0 %v484_v6  ;;  %476 = vmatpush3.bf16.msra.mxu1 %v484_v6 }
  0x14   :  { %442 = vmatprep.subr.bf16.mxu0 %v485_v7  ;;  %469 = vmatprep.subr.bf16.mxu1 %v485_v7 }
  0x17   :  { %443 = vmatpush3.bf16.msra.mxu0 %v485_v7  ;;  %477 = vmatpush3.bf16.msra.mxu1 %v485_v7 }
  0x18   :  { %444 = vmatprep.subr.bf16.mxu0 %v486_v8  ;;  %470 = vmatprep.subr.bf16.mxu1 %v486_v8 }
  0x1b   :  { %445 = vmatpush3.bf16.msra.mxu0 %v486_v8  ;;  %478 = vmatpush3.bf16.msra.mxu1 %v486_v8 }
  0x1c   :  { %446 = vmatprep.subr.bf16.mxu0 %v487_v9  ;;  %471 = vmatprep.subr.bf16.mxu1 %v487_v9 }
  0x1f   :  { %447 = vmatpush3.bf16.msra.mxu0 %v487_v9  ;;  %479 = vmatpush3.bf16.msra.mxu1 %v487_v9 }
  0x22   :  { %449 = vmatmul.mubr.bf16.vlgmr.msra.gmra.mrb[0].mxu0 %v490_v10  ;;  %457 = vmatmul.mubr.bf16.vlgmr.msra.gmra.mrb[0].mxu1 %v491_v11 }
  0x23   :  { %452 = vmatprep.mubr.bf16.mxu0 %v492_v12  ;;  %460 = vmatprep.mubr.bf16.mxu1 %v493_v13 }
  0x2a   :  { %453 = vmatmul.mubr.bf16.gmra.mrb[4].mxu0 %v494_v14  ;;  %461 = vmatmul.mubr.bf16.gmra.mrb[4].mxu1 %v495_v15 }
  0xf5   :  { %v450_v16 = vpop.f32.mrb[0].mxu0  ;;  %v458_v17 = vpop.f32.mrb[0].mxu1 }
  0xf6   :  { %v174_v18 = vpop.f32.mrb[1].mxu0  ;;  %v206_v19 = vpop.f32.mrb[1].mxu1 }
  0xf7   :  { %v451_v20 = vpop.f32.mrb[2].mxu0  ;;  %v459_v21 = vpop.f32.mrb[2].mxu1 }
  0xf8   :  { %v377_v22 = vpack.c.bf16 %v451_v20, %v450_v16  ;;  %v397_v23 = vpack.c.bf16 %v459_v21, %v458_v17  ;;  %v177_v24 = vpop.f32.mrb[3].mxu0  ;;  %v209_v25 = vpop.f32.mrb[3].mxu1 }
  0xf9   :  { %v372_v26 = vpack.c.bf16 %v177_v24, %v174_v18  ;;  %v392_v27 = vpack.c.bf16 %v209_v25, %v206_v19 }
  0xfa   :  { %409 = vst [vmem:[%s585_s2 + $0x8] sm:$0xff] %v377_v22   ;;  %413 = vst [vmem:[%s585_s2 + $0x28] sm:$0xff] %v397_v23  }
  0xfb   :  { %373 = vst [vmem:[%s585_s2] sm:$0xff] %v372_v26   ;;  %412 = vst [vmem:[%s585_s2 + $0x20] sm:$0xff] %v392_v27  }
  0xfd   :  { %v454_v28 = vpop.f32.mrb[4].mxu0  ;;  %v462_v29 = vpop.f32.mrb[4].mxu1 }
  0xfe   :  { %v190_v30 = vpop.f32.mrb[5].mxu0  ;;  %v222_v31 = vpop.f32.mrb[5].mxu1 }
  0xff   :  { %v455_v32 = vpop.f32.mrb[6].mxu0  ;;  %v463_v33 = vpop.f32.mrb[6].mxu1 }
 0x100   :  { %v387_v34 = vpack.c.bf16 %v455_v32, %v454_v28  ;;  %v407_v35 = vpack.c.bf16 %v463_v33, %v462_v29  ;;  %v193_v36 = vpop.f32.mrb[7].mxu0  ;;  %v225_v37 = vpop.f32.mrb[7].mxu1 }
 0x101   :  { %v382_v38 = vpack.c.bf16 %v193_v36, %v190_v30  ;;  %v402_v39 = vpack.c.bf16 %v225_v37, %v222_v31 }
 0x102   :  { %411 = vst [vmem:[%s585_s2 + $0x18] sm:$0xff] %v387_v34   ;;  %415 = vst [vmem:[%s585_s2 + $0x38] sm:$0xff] %v407_v35  }
 0x103   :  { %410 = vst [vmem:[%s585_s2 + $0x10] sm:$0xff] %v382_v38   ;;  %414 = vst [vmem:[%s585_s2 + $0x30] sm:$0xff] %v402_v39  }

// kernel: gcn_forward.5
= control target key start
LH: loop header
LB: loop body
LE: loop exit
PB: predicated region body
PF: predicated region fallthrough
CT: control target
= control target key end

     0   :  { %s728_s1 = inlined_call_operand.vmem [shape: bf16[128,128], index: 1, kind: input, shape index: {}]   ;;  %s729_s0 = inlined_call_operand.vmem [shape: bf16[128,128], index: 0, kind: input, shape index: {}]   ;;  %s730_s2 = inlined_call_operand.vmem [shape: f32[1,128], index: 2, kind: input, shape index: {}]   ;;  %s731_s3 = inlined_call_operand.vmem [shape: bf16[128,128], index: 3, kind: output, shape index: {}]  }
   0x1   :  { %v617_v0 = vld [vmem:[%s728_s1] sm:$0xff]   ;;  %v618_v1 = vld [vmem:[%s728_s1 + $0x8] sm:$0xff]   ;;  %v619_v2 = vld [vmem:[%s728_s1 + $0x10] sm:$0xff]  }
   0x2   :  { %569 = vmatprep.subr.bf16.mxu0 %v617_v0  ;;  %601 = vmatprep.subr.bf16.mxu1 %v617_v0  ;;  %v620_v3 = vld [vmem:[%s728_s1 + $0x18] sm:$0xff]   ;;  %v625_v4 = vld [vmem:[%s729_s0] sm:$0xff]   ;;  %v622_v7 = vld [vmem:[%s728_s1 + $0x28] sm:$0xff]  }
   0x3   :  { %570 = vmatpush3.bf16.msra.mxu0 %v617_v0  ;;  %609 = vmatpush3.bf16.msra.mxu1 %v617_v0  ;;  %v626_v5 = vld [vmem:[%s729_s0 + $0x20] sm:$0xff]   ;;  %v623_v8 = vld [vmem:[%s728_s1 + $0x30] sm:$0xff]   ;;  %v624_v9 = vld [vmem:[%s728_s1 + $0x38] sm:$0xff]  }
   0x4   :  { %571 = vmatprep.subr.bf16.mxu0 %v618_v1  ;;  %602 = vmatprep.subr.bf16.mxu1 %v618_v1  ;;  %v621_v6 = vld [vmem:[%s728_s1 + $0x20] sm:$0xff]   ;;  %v627_v10 = vld [vmem:[%s729_s0 + $0x8] sm:$0xff]   ;;  %v629_v12 = vld [vmem:[%s729_s0 + $0x10] sm:$0xff]  }
   0x5   :  { %585 = vmatprep.mubr.bf16.mxu0 %v625_v4  ;;  %593 = vmatprep.mubr.bf16.mxu1 %v626_v5  ;;  %v628_v11 = vld [vmem:[%s729_s0 + $0x28] sm:$0xff]   ;;  %v630_v13 = vld [vmem:[%s729_s0 + $0x30] sm:$0xff]   ;;  %v631_v14 = vld [vmem:[%s729_s0 + $0x18] sm:$0xff]  }
   0x6   :  { %v632_v15 = vld [vmem:[%s729_s0 + $0x38] sm:$0xff]   ;;  %v473_v16 = vld [vmem:[%s730_s2] ss:$0 sm:$0xff] }
   0x7   :  { %572 = vmatpush3.bf16.msra.mxu0 %v618_v1  ;;  %610 = vmatpush3.bf16.msra.mxu1 %v618_v1 }
   0x8   :  { %573 = vmatprep.subr.bf16.mxu0 %v619_v2  ;;  %603 = vmatprep.subr.bf16.mxu1 %v619_v2 }
   0xb   :  { %574 = vmatpush3.bf16.msra.mxu0 %v619_v2  ;;  %611 = vmatpush3.bf16.msra.mxu1 %v619_v2 }
   0xc   :  { %575 = vmatprep.subr.bf16.mxu0 %v620_v3  ;;  %604 = vmatprep.subr.bf16.mxu1 %v620_v3 }
   0xf   :  { %576 = vmatpush3.bf16.msra.mxu0 %v620_v3  ;;  %612 = vmatpush3.bf16.msra.mxu1 %v620_v3 }
  0x10   :  { %577 = vmatprep.subr.bf16.mxu0 %v621_v6  ;;  %605 = vmatprep.subr.bf16.mxu1 %v621_v6 }
  0x13   :  { %578 = vmatpush3.bf16.msra.mxu0 %v621_v6  ;;  %613 = vmatpush3.bf16.msra.mxu1 %v621_v6 }
  0x14   :  { %579 = vmatprep.subr.bf16.mxu0 %v622_v7  ;;  %606 = vmatprep.subr.bf16.mxu1 %v622_v7 }
  0x17   :  { %580 = vmatpush3.bf16.msra.mxu0 %v622_v7  ;;  %614 = vmatpush3.bf16.msra.mxu1 %v622_v7 }
  0x18   :  { %581 = vmatprep.subr.bf16.mxu0 %v623_v8  ;;  %607 = vmatprep.subr.bf16.mxu1 %v623_v8 }
  0x1b   :  { %582 = vmatpush3.bf16.msra.mxu0 %v623_v8  ;;  %615 = vmatpush3.bf16.msra.mxu1 %v623_v8 }
  0x1c   :  { %583 = vmatprep.subr.bf16.mxu0 %v624_v9  ;;  %608 = vmatprep.subr.bf16.mxu1 %v624_v9 }
  0x1f   :  { %584 = vmatpush3.bf16.msra.mxu0 %v624_v9  ;;  %616 = vmatpush3.bf16.msra.mxu1 %v624_v9 }
  0x22   :  { %586 = vmatmul.mubr.bf16.vlgmr.msra.gmra.mrb[0].mxu0 %v627_v10  ;;  %594 = vmatmul.mubr.bf16.vlgmr.msra.gmra.mrb[0].mxu1 %v628_v11 }
  0x23   :  { %589 = vmatprep.mubr.bf16.mxu0 %v629_v12  ;;  %597 = vmatprep.mubr.bf16.mxu1 %v630_v13 }
  0x2a   :  { %590 = vmatmul.mubr.bf16.gmra.mrb[4].mxu0 %v631_v14  ;;  %598 = vmatmul.mubr.bf16.gmra.mrb[4].mxu1 %v632_v15 }
  0xf5   :  { %v587_v17 = vpop.f32.mrb[0].mxu0  ;;  %v595_v18 = vpop.f32.mrb[0].mxu1 }
  0xf6   :  { %v341_v19 = vadd.f32 %v587_v17, %v473_v16  ;;  %v349_v20 = vadd.f32 %v595_v18, %v473_v16  ;;  %v218_v21 = vpop.f32.mrb[1].mxu0  ;;  %v250_v22 = vpop.f32.mrb[1].mxu1 }
  0xf7   :  { %v339_v23 = vadd.f32 %v473_v16, %v218_v21  ;;  %v347_v24 = vadd.f32 %v473_v16, %v250_v22  ;;  %v588_v25 = vpop.f32.mrb[2].mxu0  ;;  %v596_v26 = vpop.f32.mrb[2].mxu1 }
  0xf8   :  { %v342_v27 = vadd.f32 %v588_v25, %v473_v16  ;;  %v350_v28 = vadd.f32 %v596_v26, %v473_v16  ;;  %v221_v29 = vpop.f32.mrb[3].mxu0  ;;  %v253_v30 = vpop.f32.mrb[3].mxu1  ;;  %v357_v33 = vmax.f32 %v341_v19, 0.0  ;;  %v365_v34 = vmax.f32 %v349_v20, 0.0 }
  0xf9   :  { %v340_v31 = vadd.f32 %v473_v16, %v221_v29  ;;  %v348_v32 = vadd.f32 %v473_v16, %v253_v30  ;;  %v355_v37 = vmax.f32 %v339_v23, 0.0  ;;  %v363_v38 = vmax.f32 %v347_v24, 0.0 }
  0xfa   :  { %v358_v35 = vmax.f32 %v342_v27, 0.0  ;;  %v366_v36 = vmax.f32 %v350_v28, 0.0 }
  0xfb   :  { %v356_v39 = vmax.f32 %v340_v31, 0.0  ;;  %v364_v40 = vmax.f32 %v348_v32, 0.0 }
  0xfc   :  { %v514_v41 = vpack.c.bf16 %v358_v35, %v357_v33  ;;  %v534_v42 = vpack.c.bf16 %v366_v36, %v365_v34 }
  0xfd   :  { %v509_v43 = vpack.c.bf16 %v356_v39, %v355_v37  ;;  %v529_v44 = vpack.c.bf16 %v364_v40, %v363_v38  ;;  %v591_v45 = vpop.f32.mrb[4].mxu0  ;;  %v599_v46 = vpop.f32.mrb[4].mxu1 }
  0xfe   :  { %546 = vst [vmem:[%s731_s3 + $0x8] sm:$0xff] %v514_v41   ;;  %550 = vst [vmem:[%s731_s3 + $0x28] sm:$0xff] %v534_v42   ;;  %v345_v47 = vadd.f32 %v591_v45, %v473_v16  ;;  %v353_v48 = vadd.f32 %v599_v46, %v473_v16  ;;  %v234_v49 = vpop.f32.mrb[5].mxu0  ;;  %v266_v50 = vpop.f32.mrb[5].mxu1 }
  0xff   :  { %510 = vst [vmem:[%s731_s3] sm:$0xff] %v509_v43   ;;  %549 = vst [vmem:[%s731_s3 + $0x20] sm:$0xff] %v529_v44   ;;  %v343_v51 = vadd.f32 %v473_v16, %v234_v49  ;;  %v351_v52 = vadd.f32 %v473_v16, %v266_v50  ;;  %v592_v53 = vpop.f32.mrb[6].mxu0  ;;  %v600_v54 = vpop.f32.mrb[6].mxu1 }
 0x100   :  { %v346_v55 = vadd.f32 %v592_v53, %v473_v16  ;;  %v354_v56 = vadd.f32 %v600_v54, %v473_v16  ;;  %v237_v57 = vpop.f32.mrb[7].mxu0  ;;  %v269_v58 = vpop.f32.mrb[7].mxu1  ;;  %v361_v61 = vmax.f32 %v345_v47, 0.0  ;;  %v369_v62 = vmax.f32 %v353_v48, 0.0 }
 0x101   :  { %v344_v59 = vadd.f32 %v473_v16, %v237_v57  ;;  %v352_v60 = vadd.f32 %v473_v16, %v269_v58  ;;  %v359_v1 = vmax.f32 %v343_v51, 0.0  ;;  %v367_v2 = vmax.f32 %v351_v52, 0.0 }
 0x102   :  { %v362_v63 = vmax.f32 %v346_v55, 0.0  ;;  %v370_v0 = vmax.f32 %v354_v56, 0.0 }
 0x103   :  { %v360_v3 = vmax.f32 %v344_v59, 0.0  ;;  %v368_v4 = vmax.f32 %v352_v60, 0.0 }
 0x104   :  { %v524_v5 = vpack.c.bf16 %v362_v63, %v361_v61  ;;  %v544_v6 = vpack.c.bf16 %v370_v0, %v369_v62 }
 0x105   :  { %v519_v7 = vpack.c.bf16 %v360_v3, %v359_v1  ;;  %v539_v8 = vpack.c.bf16 %v368_v4, %v367_v2 }
 0x106   :  { %548 = vst [vmem:[%s731_s3 + $0x18] sm:$0xff] %v524_v5   ;;  %552 = vst [vmem:[%s731_s3 + $0x38] sm:$0xff] %v544_v6  }
 0x107   :  { %547 = vst [vmem:[%s731_s3 + $0x10] sm:$0xff] %v519_v7   ;;  %551 = vst [vmem:[%s731_s3 + $0x30] sm:$0xff] %v539_v8  }

// kernel: gcn_forward.7
= control target key start
LH: loop header
LB: loop body
LE: loop exit
PB: predicated region body
PF: predicated region fallthrough
CT: control target
= control target key end

     0   :  { %s594_s1 = inlined_call_operand.vmem [shape: bf16[128,128], index: 1, kind: input, shape index: {}]   ;;  %s595_s0 = inlined_call_operand.vmem [shape: bf16[128,128], index: 0, kind: input, shape index: {}]   ;;  %s596_s2 = inlined_call_operand.vmem [shape: f32[1,128], index: 2, kind: input, shape index: {}]   ;;  %s597_s3 = inlined_call_operand.vmem [shape: f32[128,128], index: 3, kind: output, shape index: {}]  }
   0x1   :  { %v459_v0 = vld [vmem:[%s594_s1] sm:$0xff]   ;;  %v460_v1 = vld [vmem:[%s594_s1 + $0x8] sm:$0xff]   ;;  %v461_v2 = vld [vmem:[%s594_s1 + $0x10] sm:$0xff]  }
   0x2   :  { %410 = vmatprep.subr.bf16.mxu0 %v459_v0  ;;  %442 = vmatprep.subr.bf16.mxu1 %v459_v0  ;;  %v462_v3 = vld [vmem:[%s594_s1 + $0x18] sm:$0xff]   ;;  %v467_v4 = vld [vmem:[%s595_s0] sm:$0xff]   ;;  %v464_v7 = vld [vmem:[%s594_s1 + $0x28] sm:$0xff]  }
   0x3   :  { %411 = vmatpush3.bf16.msra.mxu0 %v459_v0  ;;  %450 = vmatpush3.bf16.msra.mxu1 %v459_v0  ;;  %v468_v5 = vld [vmem:[%s595_s0 + $0x20] sm:$0xff]   ;;  %v465_v8 = vld [vmem:[%s594_s1 + $0x30] sm:$0xff]   ;;  %v466_v9 = vld [vmem:[%s594_s1 + $0x38] sm:$0xff]  }
   0x4   :  { %412 = vmatprep.subr.bf16.mxu0 %v460_v1  ;;  %443 = vmatprep.subr.bf16.mxu1 %v460_v1  ;;  %v463_v6 = vld [vmem:[%s594_s1 + $0x20] sm:$0xff]   ;;  %v469_v10 = vld [vmem:[%s595_s0 + $0x8] sm:$0xff]   ;;  %v471_v12 = vld [vmem:[%s595_s0 + $0x10] sm:$0xff]  }
   0x5   :  { %426 = vmatprep.mubr.bf16.mxu0 %v467_v4  ;;  %434 = vmatprep.mubr.bf16.mxu1 %v468_v5  ;;  %v470_v11 = vld [vmem:[%s595_s0 + $0x28] sm:$0xff]   ;;  %v472_v13 = vld [vmem:[%s595_s0 + $0x30] sm:$0xff]   ;;  %v473_v14 = vld [vmem:[%s595_s0 + $0x18] sm:$0xff]  }
   0x6   :  { %v474_v15 = vld [vmem:[%s595_s0 + $0x38] sm:$0xff]   ;;  %v393_v17 = vld [vmem:[%s596_s2] ss:$0 sm:$0xff] }
   0x7   :  { %413 = vmatpush3.bf16.msra.mxu0 %v460_v1  ;;  %451 = vmatpush3.bf16.msra.mxu1 %v460_v1 }
   0x8   :  { %414 = vmatprep.subr.bf16.mxu0 %v461_v2  ;;  %444 = vmatprep.subr.bf16.mxu1 %v461_v2 }
   0xb   :  { %415 = vmatpush3.bf16.msra.mxu0 %v461_v2  ;;  %452 = vmatpush3.bf16.msra.mxu1 %v461_v2 }
   0xc   :  { %416 = vmatprep.subr.bf16.mxu0 %v462_v3  ;;  %445 = vmatprep.subr.bf16.mxu1 %v462_v3 }
   0xf   :  { %417 = vmatpush3.bf16.msra.mxu0 %v462_v3  ;;  %453 = vmatpush3.bf16.msra.mxu1 %v462_v3 }
  0x10   :  { %418 = vmatprep.subr.bf16.mxu0 %v463_v6  ;;  %446 = vmatprep.subr.bf16.mxu1 %v463_v6 }
  0x13   :  { %419 = vmatpush3.bf16.msra.mxu0 %v463_v6  ;;  %454 = vmatpush3.bf16.msra.mxu1 %v463_v6 }
  0x14   :  { %420 = vmatprep.subr.bf16.mxu0 %v464_v7  ;;  %447 = vmatprep.subr.bf16.mxu1 %v464_v7 }
  0x17   :  { %421 = vmatpush3.bf16.msra.mxu0 %v464_v7  ;;  %455 = vmatpush3.bf16.msra.mxu1 %v464_v7 }
  0x18   :  { %422 = vmatprep.subr.bf16.mxu0 %v465_v8  ;;  %448 = vmatprep.subr.bf16.mxu1 %v465_v8 }
  0x1b   :  { %423 = vmatpush3.bf16.msra.mxu0 %v465_v8  ;;  %456 = vmatpush3.bf16.msra.mxu1 %v465_v8 }
  0x1c   :  { %424 = vmatprep.subr.bf16.mxu0 %v466_v9  ;;  %449 = vmatprep.subr.bf16.mxu1 %v466_v9 }
  0x1f   :  { %425 = vmatpush3.bf16.msra.mxu0 %v466_v9  ;;  %457 = vmatpush3.bf16.msra.mxu1 %v466_v9 }
  0x22   :  { %427 = vmatmul.mubr.bf16.vlgmr.msra.gmra.mrb[0].mxu0 %v469_v10  ;;  %435 = vmatmul.mubr.bf16.vlgmr.msra.gmra.mrb[0].mxu1 %v470_v11 }
  0x23   :  { %430 = vmatprep.mubr.bf16.mxu0 %v471_v12  ;;  %438 = vmatprep.mubr.bf16.mxu1 %v472_v13 }
  0x2a   :  { %431 = vmatmul.mubr.bf16.gmra.mrb[4].mxu0 %v473_v14  ;;  %439 = vmatmul.mubr.bf16.gmra.mrb[4].mxu1 %v474_v15 }
  0xf5   :  { %v428_v16 = vpop.f32.mrb[0].mxu0  ;;  %v436_v18 = vpop.f32.mrb[0].mxu1 }
  0xf6   :  { %v218_v19 = vpop.f32.mrb[1].mxu0  ;;  %v250_v20 = vpop.f32.mrb[1].mxu1  ;;  %v341_v23 = vadd.f32 %v428_v16, %v393_v17  ;;  %v349_v24 = vadd.f32 %v436_v18, %v393_v17 }
  0xf7   :  { %v429_v21 = vpop.f32.mrb[2].mxu0  ;;  %v437_v22 = vpop.f32.mrb[2].mxu1  ;;  %v339_v27 = vadd.f32 %v393_v17, %v218_v19  ;;  %v347_v28 = vadd.f32 %v393_v17, %v250_v20 }
  0xf8   :  { %v221_v25 = vpop.f32.mrb[3].mxu0  ;;  %v253_v26 = vpop.f32.mrb[3].mxu1  ;;  %357 = vst [vmem:[%s597_s3 + $0x10] sm:$0xff] %v341_v23  ;;  %365 = vst [vmem:[%s597_s3 + $0x50] sm:$0xff] %v349_v24  ;;  %v342_v29 = vadd.f32 %v429_v21, %v393_v17  ;;  %v350_v30 = vadd.f32 %v437_v22, %v393_v17 }
  0xf9   :  { %355 = vst [vmem:[%s597_s3] sm:$0xff] %v339_v27  ;;  %363 = vst [vmem:[%s597_s3 + $0x40] sm:$0xff] %v347_v28  ;;  %v340_v31 = vadd.f32 %v393_v17, %v221_v25  ;;  %v348_v32 = vadd.f32 %v393_v17, %v253_v26 }
  0xfa   :  { %358 = vst [vmem:[%s597_s3 + $0x18] sm:$0xff] %v342_v29  ;;  %366 = vst [vmem:[%s597_s3 + $0x58] sm:$0xff] %v350_v30 }
  0xfb   :  { %356 = vst [vmem:[%s597_s3 + $0x8] sm:$0xff] %v340_v31  ;;  %364 = vst [vmem:[%s597_s3 + $0x48] sm:$0xff] %v348_v32 }
  0xfd   :  { %v432_v33 = vpop.f32.mrb[4].mxu0  ;;  %v440_v34 = vpop.f32.mrb[4].mxu1 }
  0xfe   :  { %v234_v35 = vpop.f32.mrb[5].mxu0  ;;  %v266_v36 = vpop.f32.mrb[5].mxu1  ;;  %v345_v39 = vadd.f32 %v432_v33, %v393_v17  ;;  %v353_v40 = vadd.f32 %v440_v34, %v393_v17 }
  0xff   :  { %v433_v37 = vpop.f32.mrb[6].mxu0  ;;  %v441_v38 = vpop.f32.mrb[6].mxu1  ;;  %v343_v43 = vadd.f32 %v393_v17, %v234_v35  ;;  %v351_v44 = vadd.f32 %v393_v17, %v266_v36 }
 0x100   :  { %v237_v41 = vpop.f32.mrb[7].mxu0  ;;  %v269_v42 = vpop.f32.mrb[7].mxu1  ;;  %361 = vst [vmem:[%s597_s3 + $0x30] sm:$0xff] %v345_v39  ;;  %369 = vst [vmem:[%s597_s3 + $0x70] sm:$0xff] %v353_v40  ;;  %v346_v45 = vadd.f32 %v433_v37, %v393_v17  ;;  %v354_v46 = vadd.f32 %v441_v38, %v393_v17 }
 0x101   :  { %359 = vst [vmem:[%s597_s3 + $0x20] sm:$0xff] %v343_v43  ;;  %367 = vst [vmem:[%s597_s3 + $0x60] sm:$0xff] %v351_v44  ;;  %v344_v47 = vadd.f32 %v393_v17, %v237_v41  ;;  %v352_v48 = vadd.f32 %v393_v17, %v269_v42 }
 0x102   :  { %362 = vst [vmem:[%s597_s3 + $0x38] sm:$0xff] %v346_v45  ;;  %370 = vst [vmem:[%s597_s3 + $0x78] sm:$0xff] %v354_v46 }
 0x103   :  { %360 = vst [vmem:[%s597_s3 + $0x28] sm:$0xff] %v344_v47  ;;  %368 = vst [vmem:[%s597_s3 + $0x68] sm:$0xff] %v352_v48 }

</bundles_post_ra>
